<compile_context>
chip_gen: v7x
topology: tpu7x:2x2x1
jax: 0.10.0
libtpu: 0.0.40
codegen_flags: <defaults>
</compile_context>

<pallas_src>
import jax
import jax.numpy as jnp
import numpy as np
from jax.experimental import pallas as pl
from jax.experimental.pallas import tpu as pltpu


# ---------------------------------------------------------------------------
# Glue: alpha bounding box + square bilinear resized-crop (data dependent).
# ---------------------------------------------------------------------------
def _square_resized_crop(overlay_rgba, out_size):
    """Replicates the bbox + torchvision F.resized_crop(bilinear) part of Mask.

    overlay_rgba: (4, Ho, Wo) float RGBA in [0, 1].
    Returns (4, out_size, out_size) float32.
    """
    _, Ho, Wo = overlay_rgba.shape
    S = int(out_size)
    overlay = overlay_rgba.astype(jnp.float32)

    alpha = overlay[3]
    nz = alpha != 0
    rows_any = jnp.any(nz, axis=1)
    cols_any = jnp.any(nz, axis=0)
    row_min = jnp.argmax(rows_any).astype(jnp.int32)
    row_max = (Ho - 1) - jnp.argmax(rows_any[::-1]).astype(jnp.int32)
    col_min = jnp.argmax(cols_any).astype(jnp.int32)
    col_max = (Wo - 1) - jnp.argmax(cols_any[::-1]).astype(jnp.int32)

    height = row_max - row_min
    width = col_max - col_min
    center_y = row_min + height // 2
    center_x = col_min + width // 2
    side = jnp.maximum(height, width)          # square crop
    top = center_y - side // 2
    left = center_x - side // 2

    # Bilinear resize of the (side, side) crop to (S, S): align_corners=False
    # source-index rule of torch.nn.functional.interpolate; out-of-bounds of
    # the crop box is treated as zeros (torchvision.crop zero-pads).
    scale = side.astype(jnp.float32) / float(S)
    src = (jnp.arange(S, dtype=jnp.float32) + 0.5) * scale - 0.5
    src = jnp.maximum(src, 0.0)
    i0 = jnp.floor(src).astype(jnp.int32)
    frac = src - i0.astype(jnp.float32)
    hi = jnp.maximum(side - 1, 0)
    i0 = jnp.clip(i0, 0, hi)
    i1 = jnp.clip(i0 + 1, 0, hi)

    def sample(yy, xx):
        oy = top + yy                           # (S,) rows in overlay frame
        ox = left + xx                          # (S,) cols in overlay frame
        valid = (((oy >= 0) & (oy < Ho))[:, None]
                 & ((ox >= 0) & (ox < Wo))[None, :])
        oyc = jnp.clip(oy, 0, Ho - 1)
        oxc = jnp.clip(ox, 0, Wo - 1)
        vals = overlay[:, oyc[:, None], oxc[None, :]]   # (4, S, S)
        return jnp.where(valid[None, :, :], vals, 0.0)

    v00 = sample(i0, i0)
    v01 = sample(i0, i1)
    v10 = sample(i1, i0)
    v11 = sample(i1, i1)
    wy = frac[None, :, None]
    wx = frac[None, None, :]
    return (v00 * (1.0 - wy) * (1.0 - wx) + v01 * (1.0 - wy) * wx
            + v10 * wy * (1.0 - wx) + v11 * wy * wx)


# ---------------------------------------------------------------------------
# Pallas hot path: per-pixel alpha compositing over the batch.
# ---------------------------------------------------------------------------
def _mask_kernel(img_ref, ov_ref, out_ref):
    # img_ref: (1, C, thw)  base-image block, lane-dense flattened H*W
    # ov_ref:  (1, 4, thw)  RGBA resized crop block (same for every batch step)
    # out_ref: (1, C, thw)
    img = img_ref[0].astype(jnp.float32)        # single cast per block
    ov = ov_ref[0]                              # (4, thw) f32
    content = ov[0:3, :] * 2.0 - 1.0            # fused [0,1] -> [-1,1] rescale
    alpha = ov[3:4, :]                          # (1, thw), broadcasts over C
    out_ref[0] = (img * (1.0 - alpha) + content * alpha).astype(out_ref.dtype)


def _choose_tile(hw: int, max_tile: int = 128 * 512) -> int:
    """Lane-dense tile along flattened H*W: full extent if it fits, else the
    largest multiple of 128 that divides hw and respects the VMEM budget."""
    if hw <= max_tile:
        return hw
    for t in range(max_tile - max_tile % 128, 0, -128):
        if hw % t == 0:
            return t
    return hw


def mask_composite_pallas(img, overlay_crop):
    """img: (N, 3, H, W). overlay_crop: (4, H, W) RGBA in [0,1]. -> (N, 3, H, W)."""
    N, C, H, W = img.shape
    HW = H * W
    thw = _choose_tile(HW)
    img_flat = img.reshape(N, C, HW)
    ov_flat = overlay_crop.astype(jnp.float32).reshape(1, 4, HW)

    out = pl.pallas_call(
        _mask_kernel,
        out_shape=jax.ShapeDtypeStruct((N, C, HW), img.dtype),
        grid=(N, HW // thw),
        in_specs=[
            pl.BlockSpec((1, C, thw), lambda n, t: (n, 0, t)),
            pl.BlockSpec((1, 4, thw), lambda n, t: (0, 0, t)),
        ],
        out_specs=pl.BlockSpec((1, C, thw), lambda n, t: (n, 0, t)),
        compiler_params=pltpu.CompilerParams(
            dimension_semantics=("parallel", "parallel"),
        ),
    )(img_flat, ov_flat)
    return out.reshape(N, C, H, W)


class Mask:
    """JAX/Pallas port of the PyTorch Mask module.

    The overlay is passed as a (4, Ho, Wo) float RGBA array in [0, 1]
    (the equivalent of transforms.ToTensor()(overlay_img)).  The per-batch
    .repeat(...) in the PyTorch code is redundant (all copies are identical),
    so the crop is broadcast inside the kernel instead of being materialized.
    """
    # TODO(synk): PIL image decoding / ToTensor is host-side preprocessing with
    # no Pallas equivalent; the overlay must be provided as a float array.

    def __call__(self, img, overlay_rgba, *_):
        S = img.shape[2]
        # TODO(synk): bbox + bilinear resized_crop is data-dependent gather glue
        # kept in plain JAX (tiny (4,S,S) result), not a Pallas kernel.
        crop = _square_resized_crop(overlay_rgba, S)
        return mask_composite_pallas(img, crop)


def _reference_mask(img, overlay_rgba):
    """Pure-JAX reference of the full forward for a sanity check."""
    crop = _square_resized_crop(overlay_rgba, img.shape[2])
    content = crop[:3] * 2.0 - 1.0
    alpha = crop[3:4]
    out = (img.astype(jnp.float32) * (1.0 - alpha[None])
           + content[None] * alpha[None])
    return out.astype(img.dtype)


if __name__ == "__main__":
    key = jax.random.PRNGKey(0)
    N, C, H, W = 2, 3, 16, 16
    Ho, Wo = 32, 32
    k1, k2 = jax.random.split(key)
    # Base image in [-1, 1] (the module maps overlay content to that range).
    img = jax.random.uniform(k1, (N, C, H, W), dtype=jnp.float32) * 2.0 - 1.0
    # Synthetic RGBA overlay: random RGB, alpha nonzero on a sub-rectangle.
    rgb = jax.random.uniform(k2, (3, Ho, Wo), dtype=jnp.float32)
    yy = jnp.arange(Ho)[:, None]
    xx = jnp.arange(Wo)[None, :]
    alpha = ((yy >= 6) & (yy < 26) & (xx >= 8) & (xx < 24)).astype(jnp.float32) * 0.8
    overlay_rgba = jnp.concatenate([rgb, alpha[None]], axis=0)   # (4, Ho, Wo)

    masker = Mask()
    out = masker(img, overlay_rgba)
    out = jax.block_until_ready(out)

    ref = _reference_mask(img, overlay_rgba)
    assert out.shape == img.shape and out.dtype == img.dtype
    assert np.allclose(np.asarray(out), np.asarray(ref), atol=1e-5, rtol=1e-5), \
        "Pallas mask composite mismatch vs reference"
    print("KERNEL_OK")
</pallas_src>

<mosaic_0001>
module attributes {stable_mosaic.version = 11 : i64} {
  func.func @_mask_kernel(%arg0: i32, %arg1: i32, %arg2: memref<1x3x256xf32, #tpu.memory_space<vmem>>, %arg3: memref<1x4x256xf32, #tpu.memory_space<vmem>>, %arg4: memref<1x3x256xf32, #tpu.memory_space<vmem>>) attributes {dimension_semantics = [#tpu.dimension_semantics<parallel>, #tpu.dimension_semantics<parallel>], iteration_bounds = array<i64: 2, 1>, scalar_prefetch = 0 : i64, scratch_operands = 0 : i64, tpu.core_type = #tpu.core_type<tc>, window_params = [{transform_indices = @transform_0, window_bounds = array<i64: 1, 3, 256>}, {transform_indices = @transform_1, window_bounds = array<i64: 1, 4, 256>}, {transform_indices = @transform_2, window_bounds = array<i64: 1, 3, 256>}]} {
    %c0 = arith.constant 0 : index
    %c0_0 = arith.constant 0 : index
    %c0_1 = arith.constant 0 : index
    %0 = vector.load %arg2[%c0, %c0_0, %c0_1] : memref<1x3x256xf32, #tpu.memory_space<vmem>>, vector<1x3x256xf32>
    %1 = vector.shape_cast %0 : vector<1x3x256xf32> to vector<3x256xf32>
    %c0_2 = arith.constant 0 : index
    %c0_3 = arith.constant 0 : index
    %c0_4 = arith.constant 0 : index
    %2 = vector.load %arg3[%c0_2, %c0_3, %c0_4] : memref<1x4x256xf32, #tpu.memory_space<vmem>>, vector<1x4x256xf32>
    %3 = vector.shape_cast %2 : vector<1x4x256xf32> to vector<4x256xf32>
    %4 = vector.extract_strided_slice %3 {offsets = [0, 0], sizes = [3, 256], strides = [1, 1]} : vector<4x256xf32> to vector<3x256xf32>
    %cst = arith.constant 2.000000e+00 : f32
    %5 = vector.broadcast %cst : f32 to vector<3x256xf32>
    %6 = arith.mulf %4, %5 : vector<3x256xf32>
    %cst_5 = arith.constant 1.000000e+00 : f32
    %7 = vector.broadcast %cst_5 : f32 to vector<3x256xf32>
    %8 = arith.subf %6, %7 : vector<3x256xf32>
    %9 = vector.extract_strided_slice %3 {offsets = [3, 0], sizes = [1, 256], strides = [1, 1]} : vector<4x256xf32> to vector<1x256xf32>
    %cst_6 = arith.constant 1.000000e+00 : f32
    %10 = vector.broadcast %cst_6 : f32 to vector<1x256xf32>
    %11 = arith.subf %10, %9 : vector<1x256xf32>
    %12 = vector.broadcast %11 : vector<1x256xf32> to vector<3x256xf32>
    %13 = arith.mulf %1, %12 : vector<3x256xf32>
    %14 = vector.broadcast %9 : vector<1x256xf32> to vector<3x256xf32>
    %15 = arith.mulf %8, %14 : vector<3x256xf32>
    %16 = arith.addf %13, %15 : vector<3x256xf32>
    %c0_7 = arith.constant 0 : index
    %c0_8 = arith.constant 0 : index
    %c0_9 = arith.constant 0 : index
    %17 = vector.load %arg4[%c0_7, %c0_8, %c0_9] : memref<1x3x256xf32, #tpu.memory_space<vmem>>, vector<1x3x256xf32>
    %18 = vector.shape_cast %17 : vector<1x3x256xf32> to vector<3x256xf32>
    %19 = vector.shape_cast %16 : vector<3x256xf32> to vector<1x3x256xf32>
    tpu.vector_store %arg4[%c0_7, %c0_8, %c0_9], %19 {strides = array<i32>} : memref<1x3x256xf32, #tpu.memory_space<vmem>>, vector<1x3x256xf32>,
    return
  }
  func.func @transform_0(%arg0: i32, %arg1: i32) -> (i32, i32, i32) {
    %c0_i32 = arith.constant 0 : i32
    %c0_i32_0 = arith.constant 0 : i32
    return %arg0, %c0_i32, %arg1 : i32, i32, i32
  }
  func.func @transform_1(%arg0: i32, %arg1: i32) -> (i32, i32, i32) {
    %c0_i32 = arith.constant 0 : i32
    %c0_i32_0 = arith.constant 0 : i32
    %c0_i32_1 = arith.constant 0 : i32
    return %c0_i32, %c0_i32_0, %arg1 : i32, i32, i32
  }
  func.func @transform_2(%arg0: i32, %arg1: i32) -> (i32, i32, i32) {
    %c0_i32 = arith.constant 0 : i32
    %c0_i32_0 = arith.constant 0 : i32
    return %arg0, %c0_i32, %arg1 : i32, i32, i32
  }
}

</mosaic_0001>

<bundles_post_ra>
// kernel: tpu_custom_call.1
= control target key start
LH: loop header
LB: loop body
LE: loop exit
PB: predicated region body
PF: predicated region fallthrough
CT: control target
= control target key end

     0   :  { %s440_s9 = smov 0   ;;  %s442_s10 = smov 0   ;;  %s476_s0 = inlined_call_operand.vmem [shape: f32[2,3,256], index: 0, kind: input, shape index: {}]   ;;  %s477_s1 = inlined_call_operand.vmem [shape: f32[1,4,256], index: 1, kind: input, shape index: {}]   ;;  %s478_s2 = inlined_call_operand.vmem [shape: f32[2,3,256], index: 2, kind: output, shape index: {}]  }
   0x1   :  { %s444_s11 = smov 0  }
   0x2 LB: > { %s24_s12 = sadd.s32 1, %s419_s10  ;;  %p367_p0 = scmp.ge.s32.totalorder %s423_s11, 1  ;;  %s423_s11 = sphi %s444_s11, %s12_s11   ;;  %s419_s10 = sphi %s442_s10, %s480_s10   ;;  %s415_s9 = sphi %s440_s9, %s479_s9  }
   0x3   : > { %p26_p1 = scmp.ge.s32.totalorder %s24_s12, 2  ;;  %p144_p2 = scmp.lt.s32.totalorder %s423_s11, 3 }
   0x5   : > { %s482_s12 = smov (%p26_p1, %s24_s12), 0  ;;  %p145_p3 = pnand %p367_p0, %p144_p2 }
   0x6   : > { %p180_p4 = scmp.lt.s32.totalorder (!%p145_p3), %s415_s9, 1  ;;  %v206_v0 = vld [vmem:[%s477_s1] sm:$0xff] (!%p145_p3)  ;;  %v211_v1 = vlaneseq (!%p145_p3) }
   0x7   : > { %148 = sbr.rel (%p145_p3) target bundleno = 23 (0x17), region = 28  ;;  %v209_v2 = vsub.f32 (!%p145_p3), 1.0, %v206_v0  ;;  %v207_v4 = vmul.f32 (!%p145_p3), 2.0, %v206_v0 }
   0x8   : > { %v212_v3 = vshrl.u32 (!%p145_p3), %v211_v1, 7 }
   0x9   : > { %v372_v11 = vadd.f32 (!%p145_p3), -1.0, %v207_v4 }
   0xa   : > { %v213_v5 = vsub.s32 (!%p145_p3), 3, %v212_v3  ;;  %v217_v6 = vsub.s32 (!%p145_p3), 7, %v212_v3 }
   0xc   : > { %v214_v7 = vrot.slane (!%p145_p3), %v209_v2, %v213_v5  ;;  %v218_v8 = vrot.slane (!%p145_p3), %v209_v2, %v217_v6  ;;  %v238_v9 = vrot.slane (!%p145_p3), %v206_v0, %v213_v5  ;;  %v242_v10 = vrot.slane (!%p145_p3), %v206_v0, %v217_v6 }
   0xe   : > { %s484_s9 = smov (!%p180_p4, %s415_s9), 1  ;;  %v224_v12 = vrot.slane %v214_v7, %v213_v5  ;;  %v228_v13 = vrot.slane %v218_v8, %v213_v5  ;;  %v248_v14 = vrot.slane %v238_v9, %v213_v5  ;;  %v252_v15 = vrot.slane %v242_v10, %v213_v5 }
   0xf   : > { %s375_s15 = sshll.u32 %s484_s9, 3 }
  0x10   : > { %s187_s18 = scalar_lea.vmem %s476_s0, %s375_s15  ;;  %v231_v17 = vcombine.low %v224_v12, %v228_v13  ;;  %v255_v18 = vcombine.low %v248_v14, %v252_v15  ;;  %s203_s21 = scalar_lea.vmem %s478_s2, %s375_s15 }
  0x11   : > { %v205_v16 = vld [vmem:[%s187_s18] sm:$0x77] }
  0x12   : > { %v233_v19 = vmul.f32 %v231_v17, %v205_v16  ;;  %v257_v20 = vmul.f32 %v372_v11, %v255_v18 }
  0x14   : > { %v258_v21 = vadd.f32 %v257_v20, %v233_v19 }
  0x16   : > { %259 = vst [vmem:[%s203_s21] sm:$0x77] %v258_v21 }
  0x17 PF: > { %s12_s11 = sadd.s32 1, %s423_s11   ;;  %s479_s9 = smov %s419_s10 }
  0x18   : > { %p9_p5 = scmp.ge.s32.totalorder %s12_s11, 4   ;;  %s480_s10 = smov %s482_s12 }
  0x1a   :  { %11 = sbr.rel (!%p9_p5) target bundleno = 2 (0x2), region = 61 }

</bundles_post_ra>
